<compile_context>
chip_gen: v7x
topology: tpu7x:2x2x1
jax: 0.10.0
libtpu: 0.0.40
codegen_flags: <defaults>
</compile_context>

<pallas_src>
import jax
import jax.numpy as jnp
from jax import lax
from jax.experimental import pallas as pl
from jax.experimental.pallas import tpu as pltpu


def mlp_kernel(x_ref, w0_ref, b0_ref, w1_ref, b1_ref, o_ref):
    # Batch-major blocks: x_ref (tile_b, in_f), o_ref (tile_b, out_f).
    x = x_ref[...]
    # Layer 0: Linear + LeakyReLU (negative_slope = 0.01, PyTorch default).
    h = jnp.dot(x, w0_ref[...], preferred_element_type=jnp.float32,
                precision=lax.Precision.HIGHEST) + b0_ref[...]
    h = jnp.maximum(h, 0.01 * h)
    # dropout p=0 -> identity  # TODO(synk): stochastic dropout (p>0) not implemented
    # Layer 1: Linear + LeakyReLU.
    y = jnp.dot(h, w1_ref[...], preferred_element_type=jnp.float32,
                precision=lax.Precision.HIGHEST) + b1_ref[...]
    y = jnp.maximum(y, 0.01 * y)
    # F.normalize(y, dim=1): y / max(||y||_2, 1e-12).
    # Padded tail rows (zeros) flow through harmlessly: the 1e-24 floor keeps
    # rsqrt finite and those rows are sliced off by the wrapper.
    ss = jnp.sum(y * y, axis=1, keepdims=True)            # (tile_b, 1)
    inv = lax.rsqrt(jnp.maximum(ss, 1e-24))               # == 1 / max(||y||, 1e-12)
    o_ref[...] = y * inv


def mlp_forward(x, w0, b0, w1, b1, *, tile_b=4096):
    """x: (B, in); w0: (in, hidden); b0: (hidden,); w1: (hidden, out); b1: (out,)."""
    B, in_f = x.shape
    hidden = w0.shape[1]
    out_f = w1.shape[1]

    # Tile sizing: large tiles amortize the ~0.35 us/step grid overhead, but keep
    # the grid >= 2 steps when the batch allows so "parallel" can shard the batch
    # axis across both TensorCores on v7x.  Tiles are sublane-aligned (mult. of 8).
    half_b = max(8, ((B + 1) // 2 + 7) // 8 * 8)
    tb = min(tile_b, half_b)
    padded_b = pl.cdiv(B, tb) * tb
    grid = (padded_b // tb,)

    # Tail-only padding (no transpose; no copy at all when B % tb == 0).
    x_in = x.astype(jnp.float32)
    pad = padded_b - B
    if pad:
        x_in = jnp.pad(x_in, ((0, pad), (0, 0)))

    w0c = w0.astype(jnp.float32)                        # (in, hidden)  VMEM-resident
    w1c = w1.astype(jnp.float32)                        # (hidden, out) VMEM-resident
    b0c = b0.reshape(1, hidden).astype(jnp.float32)
    b1c = b1.reshape(1, out_f).astype(jnp.float32)

    flops = 2 * padded_b * (in_f * hidden + hidden * out_f) + 6 * padded_b * (hidden + out_f)
    bytes_accessed = 4 * (x_in.size + w0c.size + w1c.size + b0c.size + b1c.size
                          + out_f * padded_b)
    cost = pl.CostEstimate(flops=flops, transcendentals=padded_b,
                           bytes_accessed=bytes_accessed)

    out = pl.pallas_call(
        mlp_kernel,
        out_shape=jax.ShapeDtypeStruct((padded_b, out_f), jnp.float32),
        grid=grid,
        in_specs=[
            pl.BlockSpec((tb, in_f), lambda i: (i, 0)),      # activations: batch-tiled
            pl.BlockSpec((in_f, hidden), lambda i: (0, 0)),  # weights/biases: resident
            pl.BlockSpec((1, hidden), lambda i: (0, 0)),
            pl.BlockSpec((hidden, out_f), lambda i: (0, 0)),
            pl.BlockSpec((1, out_f), lambda i: (0, 0)),
        ],
        out_specs=pl.BlockSpec((tb, out_f), lambda i: (i, 0)),
        compiler_params=pltpu.CompilerParams(
            dimension_semantics=("parallel",)),              # both TCs on v7x
        cost_estimate=cost,
    )(x_in, w0c, b0c, w1c, b1c)

    # Drop batch padding; output is already batch-major (B, out) like the module.
    return out if pad == 0 else out[:B]


def mlp_reference(x, w0, b0, w1, b1):
    h = x @ w0 + b0
    h = jnp.where(h > 0, h, 0.01 * h)
    y = h @ w1 + b1
    y = jnp.where(y > 0, y, 0.01 * y)
    nrm = jnp.sqrt(jnp.sum(y * y, axis=-1, keepdims=True))
    return y / jnp.maximum(nrm, 1e-12)


if __name__ == "__main__":
    # Module config (dropout=0 so F.dropout is identity):
    #   MLP(input_size=16, hidden_sizes=[32, 32], output_size=16)
    # -> layers = [Linear(16, 32), Linear(32, 16)]   (loop body empty for len==2)
    input_size, hidden, output_size = 16, 32, 16

    key = jax.random.PRNGKey(0)
    kx, kw0, kb0, kw1, kb1, kx2, kx3 = jax.random.split(key, 7)

    # Deterministic parameter init (uniform, PyTorch-Linear-style bounds).
    bound0 = 1.0 / (input_size ** 0.5)
    w0 = jax.random.uniform(kw0, (input_size, hidden), jnp.float32, -bound0, bound0)
    b0 = jax.random.uniform(kb0, (hidden,), jnp.float32, -bound0, bound0)
    bound1 = 1.0 / (hidden ** 0.5)
    w1 = jax.random.uniform(kw1, (hidden, output_size), jnp.float32, -bound1, bound1)
    b1 = jax.random.uniform(kb1, (output_size,), jnp.float32, -bound1, bound1)

    # Check 1: tiny batch (single 8-row tile, no padding copy).
    x = jax.random.normal(kx, (8, input_size), dtype=jnp.float32)
    out = mlp_forward(x, w0, b0, w1, b1)
    jax.block_until_ready(out)
    ref = mlp_reference(x, w0, b0, w1, b1)
    assert out.shape == ref.shape
    assert jnp.allclose(out, ref, atol=1e-5, rtol=1e-5)

    # Check 2: non-multiple batch, default tiling -> 2 grid steps + tail pad.
    x2 = jax.random.normal(kx2, (300, input_size), dtype=jnp.float32)
    out2 = mlp_forward(x2, w0, b0, w1, b1)
    jax.block_until_ready(out2)
    ref2 = mlp_reference(x2, w0, b0, w1, b1)
    assert out2.shape == ref2.shape
    assert jnp.allclose(out2, ref2, atol=1e-5, rtol=1e-5)

    # Check 3: explicit smaller tile -> 3 grid steps (exercises multi-step path).
    out3 = mlp_forward(x2, w0, b0, w1, b1, tile_b=128)
    jax.block_until_ready(out3)
    assert jnp.allclose(out3, ref2, atol=1e-5, rtol=1e-5)

    # Check 4: batch that divides evenly -> zero-copy input path, grid = 2.
    x3 = jax.random.normal(kx3, (1024, input_size), dtype=jnp.float32)
    out4 = mlp_forward(x3, w0, b0, w1, b1)
    jax.block_until_ready(out4)
    ref4 = mlp_reference(x3, w0, b0, w1, b1)
    assert out4.shape == ref4.shape
    assert jnp.allclose(out4, ref4, atol=1e-5, rtol=1e-5)

    print("KERNEL_OK")
</pallas_src>

<mosaic_0001>
module attributes {stable_mosaic.version = 11 : i64} {
  func.func @mlp_kernel(%arg0: i32, %arg1: memref<8x16xf32, #tpu.memory_space<vmem>>, %arg2: memref<16x32xf32, #tpu.memory_space<vmem>>, %arg3: memref<1x32xf32, #tpu.memory_space<vmem>>, %arg4: memref<32x16xf32, #tpu.memory_space<vmem>>, %arg5: memref<1x16xf32, #tpu.memory_space<vmem>>, %arg6: memref<8x16xf32, #tpu.memory_space<vmem>>) attributes {dimension_semantics = [#tpu.dimension_semantics<parallel>], iteration_bounds = array<i64: 1>, scalar_prefetch = 0 : i64, scratch_operands = 0 : i64, tpu.core_type = #tpu.core_type<tc>, window_params = [{transform_indices = @transform_0, window_bounds = array<i64: 8, 16>}, {pipeline_mode = #tpu.pipeline_mode<synchronous>, transform_indices = @transform_1, window_bounds = array<i64: 16, 32>}, {pipeline_mode = #tpu.pipeline_mode<synchronous>, transform_indices = @transform_2, window_bounds = array<i64: 1, 32>}, {pipeline_mode = #tpu.pipeline_mode<synchronous>, transform_indices = @transform_3, window_bounds = array<i64: 32, 16>}, {pipeline_mode = #tpu.pipeline_mode<synchronous>, transform_indices = @transform_4, window_bounds = array<i64: 1, 16>}, {transform_indices = @transform_5, window_bounds = array<i64: 8, 16>}]} {
    %c0 = arith.constant 0 : index
    %c0_0 = arith.constant 0 : index
    %0 = vector.load %arg1[%c0, %c0_0] : memref<8x16xf32, #tpu.memory_space<vmem>>, vector<8x16xf32>
    %c0_1 = arith.constant 0 : index
    %c0_2 = arith.constant 0 : index
    %1 = vector.load %arg2[%c0_1, %c0_2] : memref<16x32xf32, #tpu.memory_space<vmem>>, vector<16x32xf32>
    %cst = arith.constant dense<0.000000e+00> : vector<8x32xf32>
    %2 = tpu.matmul %0, %1, %cst {dimension_numbers = #tpu.dot_dimension_numbers<[1], [0], [0], [1], [0, 0, 1, 1], [], []>, precision = #tpu.contract_precision<fp32>} : vector<8x16xf32>, vector<16x32xf32>, vector<8x32xf32> -> vector<8x32xf32>
    %c0_3 = arith.constant 0 : index
    %c0_4 = arith.constant 0 : index
    %3 = vector.load %arg3[%c0_3, %c0_4] : memref<1x32xf32, #tpu.memory_space<vmem>>, vector<1x32xf32>
    %4 = vector.broadcast %3 : vector<1x32xf32> to vector<8x32xf32>
    %5 = arith.addf %2, %4 : vector<8x32xf32>
    %cst_5 = arith.constant 0.00999999977 : f32
    %6 = vector.broadcast %cst_5 : f32 to vector<8x32xf32>
    %7 = arith.mulf %6, %5 : vector<8x32xf32>
    %8 = arith.maximumf %5, %7 : vector<8x32xf32>
    %c0_6 = arith.constant 0 : index
    %c0_7 = arith.constant 0 : index
    %9 = vector.load %arg4[%c0_6, %c0_7] : memref<32x16xf32, #tpu.memory_space<vmem>>, vector<32x16xf32>
    %cst_8 = arith.constant dense<0.000000e+00> : vector<8x16xf32>
    %10 = tpu.matmul %8, %9, %cst_8 {dimension_numbers = #tpu.dot_dimension_numbers<[1], [0], [0], [1], [0, 0, 1, 1], [], []>, precision = #tpu.contract_precision<fp32>} : vector<8x32xf32>, vector<32x16xf32>, vector<8x16xf32> -> vector<8x16xf32>
    %c0_9 = arith.constant 0 : index
    %c0_10 = arith.constant 0 : index
    %11 = vector.load %arg5[%c0_9, %c0_10] : memref<1x16xf32, #tpu.memory_space<vmem>>, vector<1x16xf32>
    %12 = vector.broadcast %11 : vector<1x16xf32> to vector<8x16xf32>
    %13 = arith.addf %10, %12 : vector<8x16xf32>
    %cst_11 = arith.constant 0.00999999977 : f32
    %14 = vector.broadcast %cst_11 : f32 to vector<8x16xf32>
    %15 = arith.mulf %14, %13 : vector<8x16xf32>
    %16 = arith.maximumf %13, %15 : vector<8x16xf32>
    %17 = arith.mulf %16, %16 : vector<8x16xf32>
    %cst_12 = arith.constant dense<0.000000e+00> : vector<8xf32>
    %18 = vector.multi_reduction <add>, %17, %cst_12 [1] : vector<8x16xf32> to vector<8xf32>
    %19 = vector.shape_cast %18 : vector<8xf32> to vector<8x1xf32>
    %cst_13 = arith.constant 1.000000e-24 : f32
    %20 = vector.broadcast %cst_13 : f32 to vector<8x1xf32>
    %21 = arith.maximumf %19, %20 : vector<8x1xf32>
    %22 = math.rsqrt %21 : vector<8x1xf32>
    %23 = vector.broadcast %22 : vector<8x1xf32> to vector<8x16xf32>
    %24 = arith.mulf %16, %23 : vector<8x16xf32>
    %c0_14 = arith.constant 0 : index
    %c0_15 = arith.constant 0 : index
    %25 = vector.load %arg6[%c0_14, %c0_15] : memref<8x16xf32, #tpu.memory_space<vmem>>, vector<8x16xf32>
    tpu.vector_store %arg6[%c0_14, %c0_15], %24 {strides = array<i32>} : memref<8x16xf32, #tpu.memory_space<vmem>>, vector<8x16xf32>,
    return
  }
  func.func @transform_0(%arg0: i32) -> (i32, i32) {
    %c0_i32 = arith.constant 0 : i32
    %c0_i32_0 = arith.constant 0 : i32
    return %arg0, %c0_i32 : i32, i32
  }
  func.func @transform_1(%arg0: i32) -> (i32, i32) {
    %c0_i32 = arith.constant 0 : i32
    %c0_i32_0 = arith.constant 0 : i32
    %c0_i32_1 = arith.constant 0 : i32
    return %c0_i32, %c0_i32_0 : i32, i32
  }
  func.func @transform_2(%arg0: i32) -> (i32, i32) {
    %c0_i32 = arith.constant 0 : i32
    %c0_i32_0 = arith.constant 0 : i32
    %c0_i32_1 = arith.constant 0 : i32
    return %c0_i32, %c0_i32_0 : i32, i32
  }
  func.func @transform_3(%arg0: i32) -> (i32, i32) {
    %c0_i32 = arith.constant 0 : i32
    %c0_i32_0 = arith.constant 0 : i32
    %c0_i32_1 = arith.constant 0 : i32
    return %c0_i32, %c0_i32_0 : i32, i32
  }
  func.func @transform_4(%arg0: i32) -> (i32, i32) {
    %c0_i32 = arith.constant 0 : i32
    %c0_i32_0 = arith.constant 0 : i32
    %c0_i32_1 = arith.constant 0 : i32
    return %c0_i32, %c0_i32_0 : i32, i32
  }
  func.func @transform_5(%arg0: i32) -> (i32, i32) {
    %c0_i32 = arith.constant 0 : i32
    %c0_i32_0 = arith.constant 0 : i32
    return %arg0, %c0_i32 : i32, i32
  }
}

</mosaic_0001>

<bundles_post_ra>
// kernel: tpu_custom_call.1
= control target key start
LH: loop header
LB: loop body
LE: loop exit
PB: predicated region body
PF: predicated region fallthrough
CT: control target
= control target key end

     0   :  { %v1283_v3 = vmov 0.0|0.0   ;;  %vm1284_vm0 = vmmov 0   ;;  %v1285_v6 = vmov 0.0   ;;  %vm31_vm1 = vcmask 130048   ;;  %s1401_s0 = inlined_call_operand.vmem [shape: f32[8,16], index: 0, kind: input, shape index: {}]   ;;  %s1402_s1 = inlined_call_operand.vmem [shape: f32[16,32], index: 1, kind: input, shape index: {}]   ;;  %s1403_s2 = inlined_call_operand.vmem [shape: f32[1,32], index: 2, kind: input, shape index: {}]   ;;  %s1404_s3 = inlined_call_operand.vmem [shape: f32[32,16], index: 3, kind: input, shape index: {}]   ;;  %s1405_s4 = inlined_call_operand.vmem [shape: f32[1,16], index: 4, kind: input, shape index: {}]   ;;  %s1406_s5 = inlined_call_operand.hbm [shape: f32[8,16], index: 5, kind: output, shape index: {}]  }
   0x1   :  { %v22_v0 = vld [vmem:[%s1402_s1] sm:$0xff]  ;;  %v23_v1 = vld [vmem:[%s1402_s1 + $0x8] sm:$0xff]  ;;  %1178 = vmatprep.subr.bf16.mxu0 %v1283_v3  ;;  %1074 = vmatprep.mubr.msk.f32.mxu0 %vm1284_vm0, %v1285_v6 }
   0x2   :  { %v21_v2 = vld [vmem:[%s1401_s0] sm:$0xff]  ;;  %v36_v4 = vand.u32 4294901760, %v22_v0  ;;  %v39_v5 = vand.u32 4294901760, %v23_v1  ;;  %1202 = vmatprep.subr.bf16.mxu1 %v1283_v3  ;;  %1131 = vmatprep.mubr.msk.f32.mxu1 %vm1284_vm0, %v1285_v6 }
   0x3   :  { %v33_v7 = vsel %vm31_vm1, %v21_v2, 0 }
   0x4   :  { %10 = vsyncpa [#allocation3], 0  ;;  %v1179_v8 = vpack.c.bf16 %v39_v5, %v36_v4  ;;  %v114_v9 = vsub.f32 %v22_v0, %v36_v4  ;;  %v121_v10 = vsub.f32 %v23_v1, %v39_v5  ;;  %v102_v11 = vand.u32 4294901760, %v33_v7  ;;  %v496_v25 = vld [vmem:[%s1404_s3] sm:$0xff]  ;;  %v497_v26 = vld [vmem:[%s1404_s3 + $0x8] sm:$0xff]  ;;  %s1286_s7 = smov [#allocation2]  }
   0x5   :  { %v512_v27 = vand.u32 4294901760, %v496_v25  ;;  %v515_v28 = vand.u32 4294901760, %v497_v26  ;;  %v498_v31 = vld [vmem:[%s1404_s3 + $0x10] sm:$0xff]  ;;  %v499_v32 = vld [vmem:[%s1404_s3 + $0x18] sm:$0xff]  ;;  %v1020_v57 = vld [vmem:[%s1403_s2] ss:$0 sm:$0xff] }
   0x6   :  { %1180 = vmatpush3.bf16.msra.mxu0 %v1179_v8  ;;  %v103_v12 = vsub.f32 %v33_v7, %v102_v11  ;;  %v115_v13 = vand.u32 4294901760, %v114_v9  ;;  %v122_v14 = vand.u32 4294901760, %v121_v10  ;;  %v1185_v23 = vpack.c.bf16 %v121_v10, %v114_v9  ;;  %s1012_s8 = sshll.u32 %s1286_s7, 4  ;;  %s1013_s8 = int_to_ptr.vmem [resolvable:$true] %s1012_s8 }
   0x7   :  { %1181 = vmatprep.subr.bf16.mxu0 %v1283_v3  ;;  %v592_v29 = vsub.f32 %v496_v25, %v512_v27  ;;  %v599_v30 = vsub.f32 %v497_v26, %v515_v28  ;;  %v518_v35 = vand.u32 4294901760, %v498_v31  ;;  %v521_v36 = vand.u32 4294901760, %v499_v32  ;;  %p1264_p1 = scmp.lt.s32.totalorder %s1013_s8, %s1013_s8 }
   0x8   :  { %v104_v15 = vand.u32 4294901760, %v103_v12  ;;  %v116_v16 = vsub.f32 %v114_v9, %v115_v13  ;;  %v123_v17 = vsub.f32 %v121_v10, %v122_v14  ;;  %v1191_v24 = vpack.c.bf16 %v122_v14, %v115_v13  ;;  %v1021_v9 = vld [vmem:[%s1405_s4] ss:$0 sm:$0xff]  ;;  %s1259_s4 = scalar_lea.vmem %s1013_s8, 128 }
   0x9   :  { %v593_v33 = vand.u32 4294901760, %v592_v29  ;;  %v600_v34 = vand.u32 4294901760, %v599_v30  ;;  %v606_v39 = vsub.f32 %v498_v31, %v518_v35  ;;  %v613_v40 = vsub.f32 %v499_v32, %v521_v36  ;;  %p1260_p0 = scmp.ne.s32.totalorder %s1013_s8, %s1259_s4  ;;  %p1265_p2 = scmp.lt.s32.totalorder %s1259_s4, %s1259_s4 }
   0xa   :  { %v105_v18 = vsub.f32 %v103_v12, %v104_v15  ;;  %v117_v19 = vand.u32 4294901760, %v116_v16  ;;  %v124_v20 = vand.u32 4294901760, %v123_v17  ;;  %v1197_v51 = vpack.c.bf16 %v515_v28, %v512_v27 }
   0xb   :  { %v594_v37 = vsub.f32 %v592_v29, %v593_v33  ;;  %v601_v38 = vsub.f32 %v599_v30, %v600_v34  ;;  %v607_v43 = vand.u32 4294901760, %v606_v39  ;;  %v614_v44 = vand.u32 4294901760, %v613_v40  ;;  %p1266_p3 = por %p1265_p2, %p1264_p1 }
   0xc   :  { %v106_v21 = vand.u32 4294901760, %v105_v18  ;;  %v1182_v22 = vpack.c.bf16 %v124_v20, %v117_v19  ;;  %v1209_v52 = vpack.c.bf16 %v599_v30, %v592_v29  ;;  %v1200_v53 = vpack.c.bf16 %v521_v36, %v518_v35 }
   0xd   :  { %v595_v41 = vand.u32 4294901760, %v594_v37  ;;  %v602_v42 = vand.u32 4294901760, %v601_v38  ;;  %v608_v46 = vsub.f32 %v606_v39, %v607_v43  ;;  %v615_v47 = vsub.f32 %v613_v40, %v614_v44  ;;  %p1267_p4 = pnand %p1266_p3, %p1260_p0 }
   0xe   :  { %1075 = vmatmul.mubr.f32.vlgmr.msra.gmra.mrb[0].mxu0 %v106_v21  ;;  %v1212_v54 = vpack.c.bf16 %v613_v40, %v606_v39  ;;  %v1221_v55 = vpack.c.bf16 %v600_v34, %v593_v33  ;;  %v1224_v56 = vpack.c.bf16 %v614_v44, %v607_v43  ;;  %vm507_vm2 = vcmask 261120  }
   0xf   :  { %1183 = vmatpush3.bf16.msra.mxu0 %v1182_v22  ;;  %1081 = vmatprep.mubr.msk.f32.mxu0 %vm1284_vm0, %v1285_v6  ;;  %v1203_v45 = vpack.c.bf16 %v602_v42, %v595_v41  ;;  %v609_v48 = vand.u32 4294901760, %v608_v46  ;;  %v616_v49 = vand.u32 4294901760, %v615_v47 }
  0x10   :  { %1184 = vmatprep.subr.bf16.mxu0 %v1283_v3 }
  0x11   :  { %1204 = vmatpush3.bf16.msra.mxu1 %v1203_v45  ;;  %v1206_v50 = vpack.c.bf16 %v616_v49, %v609_v48 }
  0x12   :  { %1205 = vmatprep.subr.bf16.mxu1 %v1283_v3 }
  0x15   :  { %1207 = vmatpush3.bf16.msra.mxu1 %v1206_v50 }
  0x16   :  { %1082 = vmatmul.mubr.f32.vlgmr.msra.gmra.mrb[0].mxu0 %v102_v11  ;;  %1208 = vmatprep.subr.bf16.mxu1 %v1283_v3 }
  0x17   :  { %1186 = vmatpush3.bf16.msra.mxu0 %v1185_v23  ;;  %1088 = vmatprep.mubr.msk.f32.mxu0 %vm1284_vm0, %v1285_v6 }
  0x18   :  { %1187 = vmatprep.subr.bf16.mxu0 %v1283_v3 }
  0x1e   :  { %1089 = vmatmul.mubr.f32.vlgmr.msra.gmra.mrb[0].mxu0 %v103_v12 }
  0x1f   :  { %1189 = vmatpush3.bf16.msra.mxu0 %v1179_v8  ;;  %1095 = vmatprep.mubr.msk.f32.mxu0 %vm1284_vm0, %v1285_v6 }
  0x20   :  { %1190 = vmatprep.subr.bf16.mxu0 %v1283_v3 }
  0x26   :  { %1096 = vmatmul.mubr.f32.vlgmr.msra.gmra.mrb[0].mxu0 %v104_v15 }
  0x27   :  { %1192 = vmatpush3.bf16.msra.mxu0 %v1191_v24  ;;  %1102 = vmatprep.mubr.msk.f32.mxu0 %vm1284_vm0, %v1285_v6 }
  0x28   :  { %1193 = vmatprep.subr.bf16.mxu0 %v1283_v3 }
  0x2e   :  { %1103 = vmatmul.mubr.f32.vlgmr.msra.gmra.mrb[0].mxu0 %v102_v11 }
  0x2f   :  { %1195 = vmatpush3.bf16.msra.mxu0 %v1179_v8  ;;  %1109 = vmatprep.mubr.msk.f32.mxu0 %vm1284_vm0, %v1285_v6 }
  0x30   :  { %1196 = vmatprep.subr.bf16.mxu0 %v1283_v3 }
  0x36   :  { %1110 = vmatmul.mubr.f32.vlgmr.msra.gmra.mrb[0].mxu0 %v102_v11 }
  0x37   :  { %1120 = vmatprep.mubr.msk.f32.mxu0 %vm1284_vm0, %v1285_v6  ;;  %1198 = vmatpush3.bf16.msra.mxu0 %v1197_v51 }
  0x38   :  { %1199 = vmatprep.subr.bf16.mxu0 %v1283_v3 }
  0x3b   :  { %1201 = vmatpush3.bf16.msra.mxu0 %v1200_v53 }
 0x109   :  { %v490_v58 = vpop.f32.mrb[0].mxu0 }
 0x10a   :  { %v1232_v59 = vadd.f32 %v1020_v57, %v490_v58  ;;  %v1111_v60 = vpop.f32.mrb[1].mxu0 }
 0x10c   :  { %v494_v61 = vmul.f32 0.01, %v1232_v59 }
 0x10e   :  { %v495_v62 = vmax.f32 %v1232_v59, %v494_v61 }
 0x110   :  { %v509_v63 = vsel %vm507_vm2, %v495_v62, 0 }
 0x111   :  { %v580_v0 = vand.u32 4294901760, %v509_v63 }
 0x113   :  { %v581_v1 = vsub.f32 %v509_v63, %v580_v0  ;;  %1132 = vmatmul.mubr.f32.vlgmr.msra.gmra.mrb[0].mxu1 %v580_v0 }
 0x114   :  { %1210 = vmatpush3.bf16.msra.mxu1 %v1209_v52  ;;  %1142 = vmatprep.mubr.msk.f32.mxu1 %vm1284_vm0, %v1285_v6 }
 0x115   :  { %1211 = vmatprep.subr.bf16.mxu1 %v1283_v3  ;;  %v582_v2 = vand.u32 4294901760, %v581_v1 }
 0x117   :  { %v583_v4 = vsub.f32 %v581_v1, %v582_v2 }
 0x118   :  { %1213 = vmatpush3.bf16.msra.mxu1 %v1212_v54 }
 0x119   :  { %v584_v5 = vand.u32 4294901760, %v583_v4  ;;  %1214 = vmatprep.subr.bf16.mxu1 %v1283_v3 }
 0x11b   :  { %1121 = vmatmul.mubr.f32.vlgmr.msra.gmra.mrb[2].mxu0 %v584_v5  ;;  %1143 = vmatmul.mubr.f32.vlgmr.msra.gmra.mrb[0].mxu1 %v581_v1 }
 0x11c   :  { %1216 = vmatpush3.bf16.msra.mxu1 %v1197_v51  ;;  %1153 = vmatprep.mubr.msk.f32.mxu1 %vm1284_vm0, %v1285_v6 }
 0x11d   :  { %1217 = vmatprep.subr.bf16.mxu1 %v1283_v3 }
 0x120   :  { %1219 = vmatpush3.bf16.msra.mxu1 %v1200_v53 }
 0x121   :  { %1220 = vmatprep.subr.bf16.mxu1 %v1283_v3 }
 0x123   :  { %1154 = vmatmul.mubr.f32.vlgmr.msra.gmra.mrb[0].mxu1 %v582_v2 }
 0x124   :  { %1222 = vmatpush3.bf16.msra.mxu1 %v1221_v55  ;;  %1164 = vmatprep.mubr.msk.f32.mxu1 %vm1284_vm0, %v1285_v6 }
 0x125   :  { %1223 = vmatprep.subr.bf16.mxu1 %v1283_v3 }
 0x128   :  { %1225 = vmatpush3.bf16.msra.mxu1 %v1224_v56 }
 0x129   :  { %1226 = vmatprep.subr.bf16.mxu1 %v1283_v3 }
 0x12b   :  { %1165 = vmatmul.mubr.f32.vlgmr.msra.gmra.mrb[0].mxu1 %v580_v0 }
 0x12c   :  { %1228 = vmatpush3.bf16.msra.mxu1 %v1197_v51  ;;  %1175 = vmatprep.mubr.msk.f32.mxu1 %vm1284_vm0, %v1285_v6 }
 0x12d   :  { %1229 = vmatprep.subr.bf16.mxu1 %v1283_v3 }
 0x130   :  { %1231 = vmatpush3.bf16.msra.mxu1 %v1200_v53 }
 0x133   :  { %1176 = vmatmul.mubr.f32.vlgmr.msra.gmra.mrb[0].mxu1 %v580_v0 }
 0x1ee   :  { %v586_v7 = vpop.f32.mrb[2].mxu0 }
 0x1ef   :  { %v1122_v8 = vpop.f32.mrb[3].mxu0  ;;  %v587_v10 = vadd.f32 %v1021_v9, %v586_v7 }
 0x206   :  { %v992_v11 = vpop.f32.mrb[0].mxu1 }
 0x207   :  { %v1234_v12 = vadd.f32 %v992_v11, %v587_v10  ;;  %v1177_v13 = vpop.f32.mrb[1].mxu1 }
 0x209   :  { %v996_v14 = vmul.f32 0.01, %v1234_v12 }
 0x20b   :  { %v997_v15 = vmax.f32 %v1234_v12, %v996_v14 }
 0x20d   :  { %v998_v16 = vmul.f32 %v997_v15, %v997_v15 }
 0x20f   :  { %v999_v17 = vsel %vm31_vm1, %v998_v16, 0.0 }
 0x210   :  { %1000 = vadd.xlane.f32.xlu0 %v999_v17 }
 0x29d   :  { %v1001_v6 = vpop.xlane.xlu0 %1000 }
 0x29e   :  { %v1002_v3 = vmax.f32 %v1001_v6, 1e-24 }
 0x2a0   :  { %1257 = vrsqrt.f32 %v1002_v3 }
 0x2aa   :  { %v1258_v18 = vpop.eup %1257 }
 0x2ab   :  { %v1004_v19 = vmul.f32 %v1258_v18, %v997_v15 }
 0x2ad   :  { %1005 = vst.msk [vmem:[#allocation2] sm:$0xff] %vm31_vm1, %v1004_v19 }
 0x2ae   :  { %1270 = shalt.err (!%p1267_p4)
}
 0x2af   :  { %s1271_s11 = scalar_lea.hbm %s1406_s5, 128 }
 0x2b0   :  { %p1272_p5 = scmp.ne.s32.totalorder %s1406_s5, %s1271_s11  ;;  %p1275_p6 = scmp.lt.u32.totalorder %s1271_s11, %s1406_s5 }
 0x2b2   :  { %p1277_p7 = pnand %p1275_p6, %p1272_p5 }
 0x2b4   :  { %1280 = shalt.err (!%p1277_p7)
}
 0x2b5   :  { %1015 = dma.vmem_to_hbm [thread:$0]  %s1013_s8, 128, %s1406_s5, [#allocation3]  }
 0x2b6   :  { %1281 = dma.done.wait [#allocation3], 128  }
 0x2b7   :  { %1282 = vsyncadd [#allocation3], 4294967168 }
 0x2b8   :  { %1019 = vsyncpa [#allocation3], 1 }

</bundles_post_ra>
